<compile_context>
chip_gen: v7x
topology: tpu7x:2x2x1
jax: 0.10.0
libtpu: 0.0.40
codegen_flags: <defaults>
</compile_context>

<pallas_src>
import functools

import jax
import jax.numpy as jnp
import numpy as np
from jax.experimental import pallas as pl
from jax.experimental.pallas import tpu as pltpu

# TODO(synk): dropout is identity in eval mode (inference); training-mode dropout
# (pltpu.prng_random_bits based masking) is not implemented here.
# TODO(synk): for v7x decode (single m block) the "parallel" axis cannot shard across
# both TensorCores; splitting the f reduction across cores + an outside add is not
# implemented here.

_GELU_C = 0.7978845608028654  # sqrt(2/pi)


def _round_up(x, m):
    return (x + m - 1) // m * m


def _gated_gelu(h0, h1):
    # gelu_new: 0.5 * h * (1 + tanh(sqrt(2/pi) * (h + 0.044715 * h^3)))  (f32 math)
    return 0.5 * h0 * (1.0 + jnp.tanh(_GELU_C * (h0 + 0.044715 * (h0 * h0 * h0)))) * h1


def _ffn_kernel(x_ref, w01_ref, wo_ref, o_ref, acc_ref, *, tf):
    """One (m-tile, f-tile) step of the gated-GELU FFN (multi f-block, accumulating).

    x_ref  : (tm, d_model)        current row tile of the input
    w01_ref: (d_model, 2*tf)      fused [wi_0^T | wi_1^T] chunk for this d_ff slice
    wo_ref : (tf, d_model)        chunk of wo^T (rows = d_ff slice)
    o_ref  : (tm, d_model)        output tile (resident across the f axis)
    acc_ref: (tm, d_model) f32    accumulator scratch
    """
    f = pl.program_id(1)

    @pl.when(f == 0)
    def _():
        acc_ref[...] = jnp.zeros_like(acc_ref)

    # Single N=2*tf matmul for both input projections (halves weight DMAs / MXU pushes).
    h01 = jnp.dot(x_ref[...], w01_ref[...], preferred_element_type=jnp.float32)
    h0 = h01[:, :tf]   # wi_0 projection chunk (lane-aligned static slice)
    h1 = h01[:, tf:]   # wi_1 projection chunk

    hidden = _gated_gelu(h0, h1).astype(wo_ref.dtype)

    # Partial contribution to the output projection (reduction over d_ff).
    acc_ref[...] += jnp.dot(hidden, wo_ref[...], preferred_element_type=jnp.float32)

    @pl.when(f == pl.num_programs(1) - 1)
    def _():
        o_ref[...] = acc_ref[...].astype(o_ref.dtype)


def _ffn_kernel_single(x_ref, w01_ref, wo_ref, o_ref, *, tf):
    """Single f-block variant: no accumulator scratch, no init/finalize phases."""
    h01 = jnp.dot(x_ref[...], w01_ref[...], preferred_element_type=jnp.float32)
    h0 = h01[:, :tf]
    h1 = h01[:, tf:]
    hidden = _gated_gelu(h0, h1).astype(wo_ref.dtype)
    o_ref[...] = jnp.dot(hidden, wo_ref[...],
                         preferred_element_type=jnp.float32).astype(o_ref.dtype)


def select_tiles(M, d_model, d_ff, compute_dtype=jnp.bfloat16):
    """Pick (tm, tf, vmem_limit_bytes) from chip VMEM capacity and roofline ridge."""
    try:
        vmem_cap = pltpu.get_tpu_info().vmem_capacity_bytes
    except Exception:
        vmem_cap = 128 * 1024 * 1024  # assume 128 MiB-class if query unavailable

    itemsize = int(np.dtype(compute_dtype).itemsize)
    small_vmem = vmem_cap <= 64 * 1024 * 1024  # v7x-class: 64 MiB per TensorCore
    if small_vmem:
        tm_default, tf_default = 384, 256      # v7x ridge ~310 FLOP/byte
    else:
        tm_default, tf_default = 768, 512      # v6e ridge ~650; v5e ~240 (both covered)
    if itemsize >= 4:                          # f32 debug path: halve row tile
        tm_default //= 2

    # Leave headroom for Mosaic internal scratch (never hand it the full physical VMEM).
    vmem_limit = max(32 * 2**20,
                     min(int(vmem_cap * 0.78), vmem_cap - 16 * 2**20))

    tm = min(tm_default, _round_up(M, 8))
    tf = min(tf_default, _round_up(d_ff, 128))

    def working_set(tm_, tf_):
        return (tm_ * d_model * itemsize * 2          # x tile, double-buffered
                + d_model * 2 * tf_ * itemsize * 2    # fused [wi_0|wi_1] block
                + tf_ * d_model * itemsize * 2        # wo block
                + tm_ * d_model * 4 * 2               # output block (f32 worst case)
                + tm_ * d_model * 4)                  # f32 accumulator scratch

    # Shrink tiles if the double-buffered working set would not fit (large d_model / v7x).
    while working_set(tm, tf) > int(0.85 * vmem_limit) and (tm > 64 or tf > 128):
        if tm >= tf and tm > 64:
            tm = max(64, _round_up(tm // 2, 8))
        elif tf > 128:
            tf = max(128, _round_up(tf // 2, 128))
        else:
            break
    return tm, tf, vmem_limit


def prepare_gated_ffn_weights(w0, w1, wo, *, tf, compute_dtype=jnp.bfloat16):
    """ONE-TIME (model-load) weight preprocessing; keep its outputs around.

    w0, w1: (d_ff, d_model)  PyTorch nn.Linear layout (out_features, in_features)
    wo    : (d_model, d_ff)

    Returns:
      w01: (d_model, 2*Fp)  per-f-block interleaved [wi_0^T | wi_1^T], padded & cast
      wot: (Fp, d_model)    wo^T, padded & cast
    """
    d_ff, d_model = w0.shape
    Fp = _round_up(d_ff, tf)

    w0t = w0.T.astype(compute_dtype)   # (d_model, d_ff)
    w1t = w1.T.astype(compute_dtype)   # (d_model, d_ff)
    wot = wo.T.astype(compute_dtype)   # (d_ff, d_model)
    if Fp != d_ff:
        # Zero-padding d_ff is exact: gelu(0) * 0 contributes 0 to the output.
        w0t = jnp.pad(w0t, ((0, 0), (0, Fp - d_ff)))
        w1t = jnp.pad(w1t, ((0, 0), (0, Fp - d_ff)))
        wot = jnp.pad(wot, ((0, Fp - d_ff), (0, 0)))

    fb = Fp // tf
    # Interleave per f-block so block f is [w0 chunk f | w1 chunk f] -> one DMA + one matmul.
    w01 = jnp.concatenate(
        [w0t.reshape(d_model, fb, tf), w1t.reshape(d_model, fb, tf)], axis=2
    ).reshape(d_model, 2 * Fp)
    return w01, wot


@functools.partial(jax.jit, static_argnames=("tm", "tf", "vmem_limit"))
def gated_gelu_ffn(hidden_states, w01, wot, *, tm, tf, vmem_limit):
    """Hot path: takes pre-prepared weights (see prepare_gated_ffn_weights)."""
    B, S, d_model = hidden_states.shape
    Fp = w01.shape[1] // 2
    out_dtype = hidden_states.dtype
    M = B * S

    x = hidden_states.reshape(M, d_model).astype(w01.dtype)
    Mp = _round_up(M, tm)
    if Mp != M:
        x = jnp.pad(x, ((0, Mp - M), (0, 0)))

    grid = (Mp // tm, Fp // tf)
    if grid[1] == 1:
        kernel = functools.partial(_ffn_kernel_single, tf=tf)
        scratch_shapes = []
    else:
        kernel = functools.partial(_ffn_kernel, tf=tf)
        scratch_shapes = [pltpu.VMEM((tm, d_model), jnp.float32)]

    out = pl.pallas_call(
        kernel,
        out_shape=jax.ShapeDtypeStruct((Mp, d_model), out_dtype),
        grid_spec=pltpu.PrefetchScalarGridSpec(
            num_scalar_prefetch=0,
            grid=grid,
            in_specs=[
                pl.BlockSpec((tm, d_model), lambda m, f: (m, 0)),      # x rows
                pl.BlockSpec((d_model, 2 * tf), lambda m, f: (0, f)),  # [wi_0|wi_1]^T
                pl.BlockSpec((tf, d_model), lambda m, f: (f, 0)),      # wo^T
            ],
            out_specs=pl.BlockSpec((tm, d_model), lambda m, f: (m, 0)),
            scratch_shapes=scratch_shapes,
        ),
        compiler_params=pltpu.CompilerParams(
            dimension_semantics=("parallel", "arbitrary"),
            vmem_limit_bytes=vmem_limit),
    )(x, w01, wot)

    if Mp != M:
        out = out[:M]
    return out.reshape(B, S, d_model)


def t5_dense_gated_gelu_dense(hidden_states, w0, w1, wo, *,
                              compute_dtype=jnp.bfloat16):
    """Convenience wrapper matching the PyTorch module signature.

    Production code should call select_tiles / prepare_gated_ffn_weights ONCE at
    model-load time and then call gated_gelu_ffn directly on the hot path.
    """
    B, S, d_model = hidden_states.shape
    d_ff = w0.shape[0]
    tm, tf, vmem_limit = select_tiles(B * S, d_model, d_ff, compute_dtype)
    w01, wot = prepare_gated_ffn_weights(w0, w1, wo, tf=tf, compute_dtype=compute_dtype)
    return gated_gelu_ffn(hidden_states, w01, wot, tm=tm, tf=tf, vmem_limit=vmem_limit)


def _reference(hidden_states, w0, w1, wo):
    """Plain-JAX f32 reference for the PyTorch forward (eval mode, dropout = identity)."""
    h0 = hidden_states @ w0.T
    h1 = hidden_states @ w1.T
    g = 0.5 * h0 * (1.0 + jnp.tanh(_GELU_C * (h0 + 0.044715 * h0 ** 3)))
    return (g * h1) @ wo.T


if __name__ == "__main__":
    key = jax.random.PRNGKey(0)

    # ---- Test A: small module-consistent shapes (single f-block fast path) ----
    B, S, d_model, d_ff = 2, 8, 128, 256
    kx, k0, k1, k2, key = jax.random.split(key, 5)
    x = jax.random.normal(kx, (B, S, d_model), dtype=jnp.float32)
    scale = (2.0 / (d_model + d_ff)) ** 0.5
    w0 = jax.random.normal(k0, (d_ff, d_model), dtype=jnp.float32) * scale
    w1 = jax.random.normal(k1, (d_ff, d_model), dtype=jnp.float32) * scale
    wo = jax.random.normal(k2, (d_model, d_ff), dtype=jnp.float32) * scale

    ref = _reference(x, w0, w1, wo)

    # Strict-precision (debug) path: f32 operands on the MXU.
    out_f32 = jax.block_until_ready(
        t5_dense_gated_gelu_dense(x, w0, w1, wo, compute_dtype=jnp.float32))
    assert out_f32.shape == (B, S, d_model)
    assert jnp.allclose(out_f32, ref, atol=1e-3, rtol=1e-3), "f32 mismatch vs reference"

    # Production path: bf16 operands, f32 accumulation.
    out_bf16 = jax.block_until_ready(t5_dense_gated_gelu_dense(x, w0, w1, wo))
    assert out_bf16.shape == (B, S, d_model)
    assert jnp.allclose(out_bf16, ref, atol=1e-1, rtol=1e-1), "bf16 mismatch vs reference"

    # ---- Test B: forced multi-f-block tiles -> exercises accumulator + M/d_ff padding ----
    B2, S2, d_model2, d_ff2 = 2, 9, 128, 320   # M=18 (pad rows), d_ff not a tile multiple
    kx, k0, k1, k2, key = jax.random.split(key, 5)
    x2 = jax.random.normal(kx, (B2, S2, d_model2), dtype=jnp.float32)
    scale2 = (2.0 / (d_model2 + d_ff2)) ** 0.5
    w0b = jax.random.normal(k0, (d_ff2, d_model2), dtype=jnp.float32) * scale2
    w1b = jax.random.normal(k1, (d_ff2, d_model2), dtype=jnp.float32) * scale2
    wob = jax.random.normal(k2, (d_model2, d_ff2), dtype=jnp.float32) * scale2

    ref2 = _reference(x2, w0b, w1b, wob)
    tm2, tf2 = 16, 128   # small forced tiles: grid = (2 m-blocks, 3 f-blocks)
    w01b, wotb = prepare_gated_ffn_weights(w0b, w1b, wob, tf=tf2,
                                           compute_dtype=jnp.float32)
    out2 = jax.block_until_ready(
        gated_gelu_ffn(x2, w01b, wotb, tm=tm2, tf=tf2, vmem_limit=64 * 1024 * 1024))
    assert out2.shape == (B2, S2, d_model2)
    assert jnp.allclose(out2, ref2, atol=1e-3, rtol=1e-3), "multi-block mismatch vs reference"

    print("KERNEL_OK")
</pallas_src>

<mosaic_0001>
module attributes {stable_mosaic.version = 11 : i64} {
  func.func @_ffn_kernel_single(%arg0: i32, %arg1: i32, %arg2: memref<16x128xf32, #tpu.memory_space<vmem>>, %arg3: memref<128x512xf32, #tpu.memory_space<vmem>>, %arg4: memref<256x128xf32, #tpu.memory_space<vmem>>, %arg5: memref<16x128xf32, #tpu.memory_space<vmem>>) attributes {dimension_semantics = [#tpu.dimension_semantics<parallel>, #tpu.dimension_semantics<arbitrary>], iteration_bounds = array<i64: 1, 1>, scalar_prefetch = 0 : i64, scratch_operands = 0 : i64, tpu.core_type = #tpu.core_type<tc>, window_params = [{transform_indices = @transform_0, window_bounds = array<i64: 16, 128>}, {transform_indices = @transform_1, window_bounds = array<i64: 128, 512>}, {transform_indices = @transform_2, window_bounds = array<i64: 256, 128>}, {transform_indices = @transform_3, window_bounds = array<i64: 16, 128>}]} {
    %c0 = arith.constant 0 : index
    %c0_0 = arith.constant 0 : index
    %0 = vector.load %arg2[%c0, %c0_0] : memref<16x128xf32, #tpu.memory_space<vmem>>, vector<16x128xf32>
    %c0_1 = arith.constant 0 : index
    %c0_2 = arith.constant 0 : index
    %1 = vector.load %arg3[%c0_1, %c0_2] : memref<128x512xf32, #tpu.memory_space<vmem>>, vector<128x512xf32>
    %cst = arith.constant dense<0.000000e+00> : vector<16x512xf32>
    %2 = tpu.matmul %0, %1, %cst {dimension_numbers = #tpu.dot_dimension_numbers<[1], [0], [0], [1], [0, 0, 1, 1], [], []>} : vector<16x128xf32>, vector<128x512xf32>, vector<16x512xf32> -> vector<16x512xf32>
    %3 = vector.extract_strided_slice %2 {offsets = [0, 0], sizes = [16, 256], strides = [1, 1]} : vector<16x512xf32> to vector<16x256xf32>
    %4 = vector.extract_strided_slice %2 {offsets = [0, 256], sizes = [16, 256], strides = [1, 1]} : vector<16x512xf32> to vector<16x256xf32>
    %cst_3 = arith.constant 5.000000e-01 : f32
    %5 = vector.broadcast %cst_3 : f32 to vector<16x256xf32>
    %6 = arith.mulf %5, %3 : vector<16x256xf32>
    %7 = arith.mulf %3, %3 : vector<16x256xf32>
    %8 = arith.mulf %7, %3 : vector<16x256xf32>
    %cst_4 = arith.constant 4.471500e-02 : f32
    %9 = vector.broadcast %cst_4 : f32 to vector<16x256xf32>
    %10 = arith.mulf %9, %8 : vector<16x256xf32>
    %11 = arith.addf %3, %10 : vector<16x256xf32>
    %cst_5 = arith.constant 0.797884583 : f32
    %12 = vector.broadcast %cst_5 : f32 to vector<16x256xf32>
    %13 = arith.mulf %12, %11 : vector<16x256xf32>
    %14 = math.tanh %13 : vector<16x256xf32>
    %cst_6 = arith.constant 1.000000e+00 : f32
    %15 = vector.broadcast %cst_6 : f32 to vector<16x256xf32>
    %16 = arith.addf %15, %14 : vector<16x256xf32>
    %17 = arith.mulf %6, %16 : vector<16x256xf32>
    %18 = arith.mulf %17, %4 : vector<16x256xf32>
    %c0_7 = arith.constant 0 : index
    %c0_8 = arith.constant 0 : index
    %19 = vector.load %arg4[%c0_7, %c0_8] : memref<256x128xf32, #tpu.memory_space<vmem>>, vector<256x128xf32>
    %cst_9 = arith.constant dense<0.000000e+00> : vector<16x128xf32>
    %20 = tpu.matmul %18, %19, %cst_9 {dimension_numbers = #tpu.dot_dimension_numbers<[1], [0], [0], [1], [0, 0, 1, 1], [], []>} : vector<16x256xf32>, vector<256x128xf32>, vector<16x128xf32> -> vector<16x128xf32>
    %c0_10 = arith.constant 0 : index
    %c0_11 = arith.constant 0 : index
    %21 = vector.load %arg5[%c0_10, %c0_11] : memref<16x128xf32, #tpu.memory_space<vmem>>, vector<16x128xf32>
    tpu.vector_store %arg5[%c0_10, %c0_11], %20 {strides = array<i32>} : memref<16x128xf32, #tpu.memory_space<vmem>>, vector<16x128xf32>,
    return
  }
  func.func @transform_0(%arg0: i32, %arg1: i32) -> (i32, i32) {
    %c0_i32 = arith.constant 0 : i32
    %c0_i32_0 = arith.constant 0 : i32
    return %arg0, %c0_i32 : i32, i32
  }
  func.func @transform_1(%arg0: i32, %arg1: i32) -> (i32, i32) {
    %c0_i32 = arith.constant 0 : i32
    %c0_i32_0 = arith.constant 0 : i32
    return %c0_i32, %arg1 : i32, i32
  }
  func.func @transform_2(%arg0: i32, %arg1: i32) -> (i32, i32) {
    %c0_i32 = arith.constant 0 : i32
    %c0_i32_0 = arith.constant 0 : i32
    return %arg1, %c0_i32 : i32, i32
  }
  func.func @transform_3(%arg0: i32, %arg1: i32) -> (i32, i32) {
    %c0_i32 = arith.constant 0 : i32
    %c0_i32_0 = arith.constant 0 : i32
    return %arg0, %c0_i32 : i32, i32
  }
}

</mosaic_0001>

<bundles_post_ra>
// kernel: gated_gelu_ffn.1
= control target key start
LH: loop header
LB: loop body
LE: loop exit
PB: predicated region body
PF: predicated region fallthrough
CT: control target
= control target key end

     0   :  { %8 = vsyncpa [#allocation3], 0  ;;  %s794_s0 = inlined_call_operand.hbm [shape: f32[16,128], index: 0, kind: input, shape index: {}]   ;;  %s795_s1 = inlined_call_operand.hbm [shape: f32[128,512], index: 1, kind: input, shape index: {}]   ;;  %s796_s2 = inlined_call_operand.hbm [shape: f32[256,128], index: 2, kind: input, shape index: {}]   ;;  %s797_s3 = inlined_call_operand.hbm [shape: f32[16,128], index: 3, kind: output, shape index: {}]  }
   0x1   :  { %9 = vsyncpa [#allocation6], 0 }
   0x2   :  { %10 = vsyncpa [#allocation4], 0  ;;  %s704_s12 = smov [#allocation5]   ;;  %s610_s16 = scalar_lea.hbm %s795_s1, 8192 }
   0x3   :  { %s28_s13 = sshll.u32 %s704_s12, 4  ;;  %p611_p0 = scmp.ne.s32.totalorder %s795_s1, %s610_s16  ;;  %s29_s13 = int_to_ptr.vmem [resolvable:$true] %s28_s13 }
   0x4   :  { %p614_p1 = scmp.lt.u32.totalorder %s610_s16, %s795_s1 }
   0x6   :  { %p616_p2 = pnand %p614_p1, %p611_p0 }
   0x8   :  { %619 = shalt.err (!%p616_p2)
}
   0x9   :  { %s620_s21 = scalar_lea.vmem %s29_s13, 8192  ;;  %p625_p4 = scmp.lt.s32.totalorder %s29_s13, %s29_s13 }
   0xa   :  { %p621_p3 = scmp.ne.s32.totalorder %s29_s13, %s620_s21  ;;  %p626_p5 = scmp.lt.s32.totalorder %s620_s21, %s620_s21 }
   0xc   :  { %p627_p6 = por %p626_p5, %p625_p4 }
   0xe   :  { %p628_p7 = pnand %p627_p6, %p621_p3 }
  0x10   :  { %631 = shalt.err (!%p628_p7)
}
  0x11   :  { %s705_s22 = smov 512   ;;  %s706_s23 = smov 32  }
  0x12   :  { %34 = dma.hbm_to_vmem [thread:$0]  %s795_s1, 8192, %s29_s13, [#allocation6], %s705_s22, %s705_s22, %s706_s23  }
  0x13   :  { %s707_s26 = smov [#allocation2]   ;;  %s632_s30 = scalar_lea.hbm %s794_s0, 256 }
  0x14   :  { %s16_s27 = sshll.u32 %s707_s26, 4  ;;  %p633_p8 = scmp.ne.s32.totalorder %s794_s0, %s632_s30  ;;  %s17_s27 = int_to_ptr.vmem [resolvable:$true] %s16_s27 }
  0x15   :  { %p636_p9 = scmp.lt.u32.totalorder %s632_s30, %s794_s0 }
  0x17   :  { %p638_p10 = pnand %p636_p9, %p633_p8 }
  0x19   :  { %641 = shalt.err (!%p638_p10)
}
  0x1a   :  { %s642_s8 = scalar_lea.vmem %s17_s27, 256  ;;  %p647_p12 = scmp.lt.s32.totalorder %s17_s27, %s17_s27 }
  0x1b   :  { %p643_p11 = scmp.ne.s32.totalorder %s17_s27, %s642_s8  ;;  %p648_p13 = scmp.lt.s32.totalorder %s642_s8, %s642_s8 }
  0x1d   :  { %p649_p0 = por %p648_p13, %p647_p12 }
  0x1f   :  { %p650_p1 = pnand %p649_p0, %p643_p11 }
  0x21   :  { %653 = shalt.err (!%p650_p1)
}
  0x22   :  { %s708_s1 = smov 128   ;;  %s709_s9 = smov 8  }
  0x23   :  { %22 = dma.hbm_to_vmem [thread:$0]  %s794_s0, 256, %s17_s27, [#allocation3], %s708_s1, %s708_s1, %s709_s9  }
  0x24   :  { %s710_s12 = smov [#allocation7]   ;;  %s654_s16 = scalar_lea.hbm %s796_s2, 4096 }
  0x25   :  { %s40_s13 = sshll.u32 %s710_s12, 4  ;;  %p655_p2 = scmp.ne.s32.totalorder %s796_s2, %s654_s16  ;;  %s41_s13 = int_to_ptr.vmem [resolvable:$true] %s40_s13 }
  0x26   :  { %p658_p3 = scmp.lt.u32.totalorder %s654_s16, %s796_s2 }
  0x28   :  { %p660_p4 = pnand %p658_p3, %p655_p2 }
  0x2a   :  { %663 = shalt.err (!%p660_p4)
}
  0x2b   :  { %s664_s21 = scalar_lea.vmem %s41_s13, 4096  ;;  %p669_p6 = scmp.lt.s32.totalorder %s41_s13, %s41_s13 }
  0x2c   :  { %p665_p5 = scmp.ne.s32.totalorder %s41_s13, %s664_s21  ;;  %p670_p7 = scmp.lt.s32.totalorder %s664_s21, %s664_s21 }
  0x2e   :  { %p671_p8 = por %p670_p7, %p669_p6 }
  0x30   :  { %p672_p9 = pnand %p671_p8, %p665_p5 }
  0x32   :  { %675 = shalt.err (!%p672_p9)
}
  0x33   :  { %46 = dma.hbm_to_vmem [thread:$0]  %s796_s2, 4096, %s41_s13, [#allocation6], %s708_s1, %s708_s1, %s709_s9  }
  0x34   :  { %698 = dma.done.wait [#allocation3], 256  }
  0x35   :  { %699 = vsyncadd [#allocation3], 4294967040 }
  0x36   :  { %700 = dma.done.wait [#allocation6], 12288  }
  0x37   :  { %701 = vsyncadd [#allocation6], 4294955008  ;;  %v711_v0 = vmov 0.0   ;;  %v59_v1 = vld [vmem:[#allocation5 + $0x8] sm:$0xff]  ;;  %v58_v3 = vld [vmem:[#allocation5] sm:$0xff]  ;;  %s712_s2 = smov [#allocation8]  }
  0x38   :  { %186 = vmatprep.mubr.f32.mxu0 %v711_v0  ;;  %263 = vmatprep.mubr.f32.mxu1 %v711_v0  ;;  %v63_v2 = vld [vmem:[#allocation5 + $0x28] sm:$0xff]  ;;  %v62_v5 = vld [vmem:[#allocation5 + $0x20] sm:$0xff]  ;;  %v61_v22 = vld [vmem:[#allocation5 + $0x18] sm:$0xff]  ;;  %s430_s23 = sshll.u32 %s712_s2, 4  ;;  %s431_s23 = int_to_ptr.vmem [resolvable:$true] %s430_s23 }
  0x39   :  { %v481_v4 = vpack.c.bf16 %v63_v2, %v59_v1  ;;  %v67_v6 = vld [vmem:[#allocation5 + $0x48] sm:$0xff]  ;;  %v483_v8 = vpack.c.bf16 %v62_v5, %v58_v3  ;;  %v66_v10 = vld [vmem:[#allocation5 + $0x40] sm:$0xff]  ;;  %v65_v26 = vld [vmem:[#allocation5 + $0x38] sm:$0xff]  ;;  %s676_s24 = scalar_lea.vmem %s431_s23, 256  ;;  %p681_p11 = scmp.lt.s32.totalorder %s431_s23, %s431_s23 }
  0x3a   :  { %v71_v7 = vld [vmem:[#allocation5 + $0x68] sm:$0xff]  ;;  %v70_v11 = vld [vmem:[#allocation5 + $0x60] sm:$0xff]  ;;  %v513_v28 = vpack.c.bf16 %v65_v26, %v61_v22  ;;  %v60_v29 = vld [vmem:[#allocation5 + $0x10] sm:$0xff]  ;;  %p677_p10 = scmp.ne.s32.totalorder %s431_s23, %s676_s24  ;;  %p682_p12 = scmp.lt.s32.totalorder %s676_s24, %s676_s24 }
  0x3b   :  { %v485_v9 = vpack.c.bf16 %v71_v7, %v67_v6  ;;  %v75_v12 = vld [vmem:[#allocation5 + $0x88] sm:$0xff]  ;;  %482 = vmatprep.subr.bf16.mxu0 %v481_v4  ;;  %v487_v14 = vpack.c.bf16 %v70_v11, %v66_v10  ;;  %v74_v16 = vld [vmem:[#allocation5 + $0x80] sm:$0xff]  ;;  %v64_v30 = vld [vmem:[#allocation5 + $0x30] sm:$0xff] }
  0x3c   :  { %v79_v13 = vld [vmem:[#allocation5 + $0xa8] sm:$0xff]  ;;  %484 = vmatpush1.bf16.msra.mxu0 %v483_v8  ;;  %v78_v17 = vld [vmem:[#allocation5 + $0xa0] sm:$0xff]  ;;  %v515_v32 = vpack.c.bf16 %v64_v30, %v60_v29  ;;  %v69_v33 = vld [vmem:[#allocation5 + $0x58] sm:$0xff]  ;;  %514 = vmatprep.subr.bf16.mxu1 %v513_v28  ;;  %p683_p13 = por %p682_p12, %p681_p11 }
  0x3d   :  { %486 = vmatprep.subr.bf16.mxu0 %v485_v9  ;;  %v489_v15 = vpack.c.bf16 %v79_v13, %v75_v12  ;;  %v83_v18 = vld [vmem:[#allocation5 + $0xc8] sm:$0xff]  ;;  %v491_v20 = vpack.c.bf16 %v78_v17, %v74_v16  ;;  %v82_v21 = vld [vmem:[#allocation5 + $0xc0] sm:$0xff]  ;;  %v73_v34 = vld [vmem:[#allocation5 + $0x78] sm:$0xff] }
  0x3e   :  { %v87_v19 = vld [vmem:[#allocation5 + $0xe8] sm:$0xff]  ;;  %v86_v24 = vld [vmem:[#allocation5 + $0xe0] sm:$0xff]  ;;  %v517_v38 = vpack.c.bf16 %v73_v34, %v69_v33  ;;  %v68_v39 = vld [vmem:[#allocation5 + $0x50] sm:$0xff]  ;;  %516 = vmatpush1.bf16.msra.mxu1 %v515_v32  ;;  %p684_p0 = pnand %p683_p13, %p677_p10 }
  0x3f   :  { %v493_v23 = vpack.c.bf16 %v87_v19, %v83_v18  ;;  %v91_v25 = vld [vmem:[#allocation5 + $0x108] sm:$0xff]  ;;  %v90_v31 = vld [vmem:[#allocation5 + $0x100] sm:$0xff]  ;;  %v495_v35 = vpack.c.bf16 %v86_v24, %v82_v21  ;;  %v72_v42 = vld [vmem:[#allocation5 + $0x70] sm:$0xff] }
  0x40   :  { %488 = vmatpush1.bf16.msra.mxu0 %v487_v14  ;;  %v95_v27 = vld [vmem:[#allocation5 + $0x128] sm:$0xff]  ;;  %v94_v36 = vld [vmem:[#allocation5 + $0x120] sm:$0xff]  ;;  %v77_v43 = vld [vmem:[#allocation5 + $0x98] sm:$0xff]  ;;  %518 = vmatprep.subr.bf16.mxu1 %v517_v38  ;;  %v519_v44 = vpack.c.bf16 %v72_v42, %v68_v39 }
  0x41   :  { %490 = vmatprep.subr.bf16.mxu0 %v489_v15  ;;  %v99_v37 = vld [vmem:[#allocation5 + $0x148] sm:$0xff]  ;;  %v497_v40 = vpack.c.bf16 %v95_v27, %v91_v25  ;;  %v81_v45 = vld [vmem:[#allocation5 + $0xb8] sm:$0xff]  ;;  %v76_v46 = vld [vmem:[#allocation5 + $0x90] sm:$0xff]  ;;  %v499_v51 = vpack.c.bf16 %v94_v36, %v90_v31 }
  0x42   :  { %v103_v41 = vld [vmem:[#allocation5 + $0x168] sm:$0xff]  ;;  %v80_v47 = vld [vmem:[#allocation5 + $0xb0] sm:$0xff]  ;;  %v521_v48 = vpack.c.bf16 %v81_v45, %v77_v43  ;;  %v85_v49 = vld [vmem:[#allocation5 + $0xd8] sm:$0xff]  ;;  %520 = vmatpush1.bf16.msra.mxu1 %v519_v44 }
  0x43   :  { %v89_v50 = vld [vmem:[#allocation5 + $0xf8] sm:$0xff]  ;;  %v501_v52 = vpack.c.bf16 %v103_v41, %v99_v37  ;;  %v98_v53 = vld [vmem:[#allocation5 + $0x140] sm:$0xff]  ;;  %v107_v55 = vld [vmem:[#allocation5 + $0x188] sm:$0xff]  ;;  %v523_v56 = vpack.c.bf16 %v80_v47, %v76_v46 }
  0x44   :  { %492 = vmatpush1.bf16.msra.mxu0 %v491_v20  ;;  %v102_v54 = vld [vmem:[#allocation5 + $0x160] sm:$0xff]  ;;  %v111_v57 = vld [vmem:[#allocation5 + $0x1a8] sm:$0xff]  ;;  %522 = vmatprep.subr.bf16.mxu1 %v521_v48  ;;  %v525_v58 = vpack.c.bf16 %v89_v50, %v85_v49  ;;  %v84_v59 = vld [vmem:[#allocation5 + $0xd0] sm:$0xff] }
  0x45   :  { %494 = vmatprep.subr.bf16.mxu0 %v493_v23  ;;  %v88_v60 = vld [vmem:[#allocation5 + $0xf0] sm:$0xff]  ;;  %v93_v61 = vld [vmem:[#allocation5 + $0x118] sm:$0xff]  ;;  %v503_v63 = vpack.c.bf16 %v102_v54, %v98_v53  ;;  %v505_v1 = vpack.c.bf16 %v111_v57, %v107_v55  ;;  %v106_v2 = vld [vmem:[#allocation5 + $0x180] sm:$0xff] }
  0x46   :  { %v97_v62 = vld [vmem:[#allocation5 + $0x138] sm:$0xff]  ;;  %v110_v3 = vld [vmem:[#allocation5 + $0x1a0] sm:$0xff]  ;;  %v115_v4 = vld [vmem:[#allocation5 + $0x1c8] sm:$0xff]  ;;  %524 = vmatpush1.bf16.msra.mxu1 %v523_v56  ;;  %v527_v5 = vpack.c.bf16 %v88_v60, %v84_v59 }
  0x47   :  { %v119_v6 = vld [vmem:[#allocation5 + $0x1e8] sm:$0xff]  ;;  %526 = vmatprep.subr.bf16.mxu1 %v525_v58  ;;  %v529_v7 = vpack.c.bf16 %v97_v62, %v93_v61  ;;  %v92_v8 = vld [vmem:[#allocation5 + $0x110] sm:$0xff]  ;;  %v101_v10 = vld [vmem:[#allocation5 + $0x158] sm:$0xff]  ;;  %v507_v12 = vpack.c.bf16 %v110_v3, %v106_v2 }
  0x48   :  { %496 = vmatpush1.bf16.msra.mxu0 %v495_v35  ;;  %v96_v9 = vld [vmem:[#allocation5 + $0x130] sm:$0xff]  ;;  %v105_v11 = vld [vmem:[#allocation5 + $0x178] sm:$0xff]  ;;  %v509_v13 = vpack.c.bf16 %v119_v6, %v115_v4  ;;  %v114_v14 = vld [vmem:[#allocation5 + $0x1c0] sm:$0xff] }
  0x49   :  { %498 = vmatprep.subr.bf16.mxu0 %v497_v40  ;;  %v118_v15 = vld [vmem:[#allocation5 + $0x1e0] sm:$0xff]  ;;  %v531_v16 = vpack.c.bf16 %v96_v9, %v92_v8  ;;  %v100_v17 = vld [vmem:[#allocation5 + $0x150] sm:$0xff]  ;;  %v533_v18 = vpack.c.bf16 %v105_v11, %v101_v10  ;;  %v333_v21 = vld [vmem:[#allocation7 + $0x88] sm:$0xff] }
  0x4a   :  { %528 = vmatpush1.bf16.msra.mxu1 %v527_v5  ;;  %v104_v19 = vld [vmem:[#allocation5 + $0x170] sm:$0xff]  ;;  %v332_v20 = vld [vmem:[#allocation7 + $0x80] sm:$0xff]  ;;  %v109_v22 = vld [vmem:[#allocation5 + $0x198] sm:$0xff]  ;;  %v511_v24 = vpack.c.bf16 %v118_v15, %v114_v14 }
  0x4b   :  { %530 = vmatprep.subr.bf16.mxu1 %v529_v7  ;;  %v113_v23 = vld [vmem:[#allocation5 + $0x1b8] sm:$0xff]  ;;  %v535_v25 = vpack.c.bf16 %v104_v19, %v100_v17  ;;  %v545_v26 = vpack.c.bf16 %v333_v21, %v332_v20  ;;  %v316_v27 = vld [vmem:[#allocation7] sm:$0xff]  ;;  %v317_v28 = vld [vmem:[#allocation7 + $0x8] sm:$0xff] }
  0x4c   :  { %500 = vmatpush1.bf16.msra.mxu0 %v499_v51  ;;  %v537_v29 = vpack.c.bf16 %v113_v23, %v109_v22  ;;  %v108_v30 = vld [vmem:[#allocation5 + $0x190] sm:$0xff]  ;;  %v117_v32 = vld [vmem:[#allocation5 + $0x1d8] sm:$0xff]  ;;  %v547_v35 = vpack.c.bf16 %v317_v28, %v316_v27  ;;  %v336_v48 = vld [vmem:[#allocation7 + $0xa0] sm:$0xff] }
  0x4d   :  { %502 = vmatprep.subr.bf16.mxu0 %v501_v52  ;;  %v112_v31 = vld [vmem:[#allocation5 + $0x1b0] sm:$0xff]  ;;  %v121_v33 = vld [vmem:[#allocation5 + $0x1f8] sm:$0xff]  ;;  %v337_v49 = vld [vmem:[#allocation7 + $0xa8] sm:$0xff] }
  0x4e   :  { %532 = vmatpush1.bf16.msra.mxu1 %v531_v16  ;;  %v56_v34 = vld [vmem:[#allocation2] sm:$0xff]  ;;  %v539_v36 = vpack.c.bf16 %v112_v31, %v108_v30  ;;  %v541_v37 = vpack.c.bf16 %v121_v33, %v117_v32  ;;  %v57_v40 = vld [vmem:[#allocation2 + $0x8] sm:$0xff]  ;;  %v553_v50 = vpack.c.bf16 %v337_v49, %v336_v48  ;;  %v320_v51 = vld [vmem:[#allocation7 + $0x20] sm:$0xff] }
  0x4f   :  { %534 = vmatprep.subr.bf16.mxu1 %v533_v18  ;;  %v116_v38 = vld [vmem:[#allocation5 + $0x1d0] sm:$0xff]  ;;  %v335_v43 = vld [vmem:[#allocation7 + $0x98] sm:$0xff]  ;;  %v321_v52 = vld [vmem:[#allocation7 + $0x28] sm:$0xff] }
  0x50   :  { %504 = vmatpush1.bf16.msra.mxu0 %v503_v63  ;;  %v120_v39 = vld [vmem:[#allocation5 + $0x1f0] sm:$0xff]  ;;  %v319_v46 = vld [vmem:[#allocation7 + $0x18] sm:$0xff]  ;;  %v555_v53 = vpack.c.bf16 %v321_v52, %v320_v51  ;;  %v340_v59 = vld [vmem:[#allocation7 + $0xc0] sm:$0xff] }
  0x51   :  { %506 = vmatprep.subr.bf16.mxu0 %v505_v1  ;;  %v543_v41 = vpack.c.bf16 %v120_v39, %v116_v38  ;;  %v334_v42 = vld [vmem:[#allocation7 + $0x90] sm:$0xff]  ;;  %v339_v54 = vld [vmem:[#allocation7 + $0xb8] sm:$0xff]  ;;  %v341_v60 = vld [vmem:[#allocation7 + $0xc8] sm:$0xff] }
  0x52   :  { %536 = vmatpush1.bf16.msra.mxu1 %v535_v25  ;;  %v549_v44 = vpack.c.bf16 %v335_v43, %v334_v42  ;;  %v318_v45 = vld [vmem:[#allocation7 + $0x10] sm:$0xff]  ;;  %v323_v57 = vld [vmem:[#allocation7 + $0x38] sm:$0xff]  ;;  %v561_v61 = vpack.c.bf16 %v341_v60, %v340_v59  ;;  %v324_v62 = vld [vmem:[#allocation7 + $0x40] sm:$0xff] }
  0x53   :  { %538 = vmatprep.subr.bf16.mxu1 %v537_v29  ;;  %v551_v47 = vpack.c.bf16 %v319_v46, %v318_v45  ;;  %v322_v56 = vld [vmem:[#allocation7 + $0x30] sm:$0xff]  ;;  %v325_v63 = vld [vmem:[#allocation7 + $0x48] sm:$0xff]  ;;  %v343_v3 = vld [vmem:[#allocation7 + $0xd8] sm:$0xff] }
  0x54   :  { %508 = vmatpush1.bf16.msra.mxu0 %v507_v12  ;;  %v559_v58 = vpack.c.bf16 %v323_v57, %v322_v56  ;;  %v563_v1 = vpack.c.bf16 %v325_v63, %v324_v62  ;;  %v342_v2 = vld [vmem:[#allocation7 + $0xd0] sm:$0xff]  ;;  %v327_v6 = vld [vmem:[#allocation7 + $0x58] sm:$0xff]  ;;  %v344_v7 = vld [vmem:[#allocation7 + $0xe0] sm:$0xff] }
  0x55   :  { %510 = vmatprep.subr.bf16.mxu0 %v509_v13  ;;  %v565_v4 = vpack.c.bf16 %v343_v3, %v342_v2  ;;  %v326_v5 = vld [vmem:[#allocation7 + $0x50] sm:$0xff]  ;;  %v345_v9 = vld [vmem:[#allocation7 + $0xe8] sm:$0xff]  ;;  %v328_v10 = vld [vmem:[#allocation7 + $0x60] sm:$0xff] }
  0x56   :  { %540 = vmatpush1.bf16.msra.mxu1 %v539_v36  ;;  %v567_v8 = vpack.c.bf16 %v327_v6, %v326_v5  ;;  %v329_v11 = vld [vmem:[#allocation7 + $0x68] sm:$0xff]  ;;  %v569_v12 = vpack.c.bf16 %v345_v9, %v344_v7  ;;  %v346_v14 = vld [vmem:[#allocation7 + $0xf0] sm:$0xff]  ;;  %v347_v15 = vld [vmem:[#allocation7 + $0xf8] sm:$0xff] }
  0x57   :  { %542 = vmatprep.subr.bf16.mxu1 %v541_v37  ;;  %v571_v13 = vpack.c.bf16 %v329_v11, %v328_v10  ;;  %v573_v16 = vpack.c.bf16 %v347_v15, %v346_v14  ;;  %v330_v17 = vld [vmem:[#allocation7 + $0x70] sm:$0xff]  ;;  %v331_v18 = vld [vmem:[#allocation7 + $0x78] sm:$0xff] }
  0x58   :  { %512 = vmatpush1.bf16.msra.mxu0 %v511_v24  ;;  %v575_v19 = vpack.c.bf16 %v331_v18, %v330_v17 }
  0x59   :  { %546 = vmatprep.subr.bf16.mxu0 %v545_v26 }
  0x5a   :  { %544 = vmatpush1.bf16.msra.mxu1 %v543_v41 }
  0x5b   :  { %187 = vmatmul.mubr.f32.vlgmr.msra.gmra.mrb[0].mxu0 %v56_v34  ;;  %577 = vmatprep.subr.bf16.mxu1 %v545_v26 }
  0x5c   :  { %192 = vmatprep.mubr.f32.mxu0 %v711_v0  ;;  %548 = vmatpush3.bf16.msra.mxu0 %v547_v35 }
  0x5d   :  { %264 = vmatmul.mubr.f32.vlgmr.msra.gmra.mrb[0].mxu1 %v56_v34  ;;  %550 = vmatprep.subr.bf16.mxu0 %v549_v44 }
  0x5e   :  { %269 = vmatprep.mubr.f32.mxu1 %v711_v0  ;;  %585 = vmatpush3.bf16.msra.mxu1 %v547_v35  ;;  %v338_v0 = vld [vmem:[#allocation7 + $0xb0] sm:$0xff] }
  0x5f   :  { %193 = vmatmul.mubr.f32.gmra.mrb[2].mxu0 %v57_v40  ;;  %578 = vmatprep.subr.bf16.mxu1 %v549_v44  ;;  %v557_v55 = vpack.c.bf16 %v339_v54, %v338_v0 }
  0x60   :  { %552 = vmatpush3.bf16.msra.mxu0 %v551_v47 }
  0x61   :  { %270 = vmatmul.mubr.f32.gmra.mrb[2].mxu1 %v57_v40  ;;  %554 = vmatprep.subr.bf16.mxu0 %v553_v50 }
  0x62   :  { %586 = vmatpush3.bf16.msra.mxu1 %v551_v47 }
  0x63   :  { %579 = vmatprep.subr.bf16.mxu1 %v553_v50 }
  0x64   :  { %556 = vmatpush3.bf16.msra.mxu0 %v555_v53 }
  0x65   :  { %558 = vmatprep.subr.bf16.mxu0 %v557_v55 }
  0x66   :  { %587 = vmatpush3.bf16.msra.mxu1 %v555_v53 }
  0x67   :  { %580 = vmatprep.subr.bf16.mxu1 %v557_v55 }
  0x68   :  { %560 = vmatpush3.bf16.msra.mxu0 %v559_v58 }
  0x69   :  { %562 = vmatprep.subr.bf16.mxu0 %v561_v61 }
  0x6a   :  { %588 = vmatpush3.bf16.msra.mxu1 %v559_v58 }
  0x6b   :  { %581 = vmatprep.subr.bf16.mxu1 %v561_v61 }
  0x6c   :  { %564 = vmatpush3.bf16.msra.mxu0 %v563_v1 }
  0x6d   :  { %566 = vmatprep.subr.bf16.mxu0 %v565_v4 }
  0x6e   :  { %589 = vmatpush3.bf16.msra.mxu1 %v563_v1 }
  0x6f   :  { %582 = vmatprep.subr.bf16.mxu1 %v565_v4 }
  0x70   :  { %568 = vmatpush3.bf16.msra.mxu0 %v567_v8 }
  0x71   :  { %570 = vmatprep.subr.bf16.mxu0 %v569_v12 }
  0x72   :  { %590 = vmatpush3.bf16.msra.mxu1 %v567_v8 }
  0x73   :  { %583 = vmatprep.subr.bf16.mxu1 %v569_v12 }
  0x74   :  { %572 = vmatpush3.bf16.msra.mxu0 %v571_v13 }
  0x75   :  { %574 = vmatprep.subr.bf16.mxu0 %v573_v16 }
  0x76   :  { %591 = vmatpush3.bf16.msra.mxu1 %v571_v13 }
  0x77   :  { %584 = vmatprep.subr.bf16.mxu1 %v573_v16 }
  0x78   :  { %576 = vmatpush3.bf16.msra.mxu0 %v575_v19 }
  0x7a   :  { %592 = vmatpush3.bf16.msra.mxu1 %v575_v19 }
 0x12e   :  { %v188_v20 = vpop.f32.mrb[0].mxu0 }
 0x12f   :  { %v280_v21 = vmul.f32 %v188_v20, %v188_v20  ;;  %v190_v22 = vpop.f32.mrb[1].mxu0  ;;  %v276_v50 = vmul.f32 0.5, %v188_v20 }
 0x130   :  { %v281_v23 = vmul.f32 %v190_v22, %v190_v22  ;;  %v265_v38 = vpop.f32.mrb[0].mxu1  ;;  %v277_v52 = vmul.f32 0.5, %v190_v22 }
 0x131   :  { %v284_v24 = vmul.f32 %v280_v21, %v188_v20  ;;  %v267_v41 = vpop.f32.mrb[1].mxu1 }
 0x132   :  { %v285_v25 = vmul.f32 %v281_v23, %v190_v22  ;;  %v194_v26 = vpop.f32.mrb[2].mxu0 }
 0x133   :  { %v288_v27 = vmul.f32 0.044715, %v284_v24  ;;  %v282_v28 = vmul.f32 %v194_v26, %v194_v26  ;;  %v196_v29 = vpop.f32.mrb[3].mxu0  ;;  %v278_v58 = vmul.f32 0.5, %v194_v26 }
 0x134   :  { %v289_v30 = vmul.f32 0.044715, %v285_v25  ;;  %v283_v31 = vmul.f32 %v196_v29, %v196_v29  ;;  %v271_v45 = vpop.f32.mrb[2].mxu1  ;;  %v279_v61 = vmul.f32 0.5, %v196_v29 }
 0x135   :  { %v292_v32 = vadd.f32 %v288_v27, %v188_v20  ;;  %v286_v33 = vmul.f32 %v282_v28, %v194_v26  ;;  %v273_v47 = vpop.f32.mrb[3].mxu1 }
 0x136   :  { %v293_v34 = vadd.f32 %v289_v30, %v190_v22  ;;  %v287_v35 = vmul.f32 %v283_v31, %v196_v29 }
 0x137   :  { %v296_v36 = vmul.f32 0.7978846, %v292_v32  ;;  %v290_v37 = vmul.f32 0.044715, %v286_v33 }
 0x138   :  { %v297_v39 = vmul.f32 0.7978846, %v293_v34  ;;  %v291_v40 = vmul.f32 0.044715, %v287_v35 }
 0x139   :  { %602 = vtanh.f32 %v296_v36  ;;  %v294_v42 = vadd.f32 %v290_v37, %v194_v26 }
 0x13a   :  { %604 = vtanh.f32 %v297_v39  ;;  %v295_v43 = vadd.f32 %v291_v40, %v196_v29 }
 0x13b   :  { %v298_v44 = vmul.f32 0.7978846, %v294_v42 }
 0x13c   :  { %v299_v46 = vmul.f32 0.7978846, %v295_v43 }
 0x13d   :  { %606 = vtanh.f32 %v298_v44 }
 0x13e   :  { %608 = vtanh.f32 %v299_v46 }
 0x143   :  { %v603_v48 = vpop.eup %602 }
 0x144   :  { %v605_v49 = vpop.eup %604  ;;  %v304_v51 = vadd.f32 1.0, %v603_v48 }
 0x145   :  { %v305_v53 = vadd.f32 1.0, %v605_v49 }
 0x146   :  { %v308_v0 = vmul.f32 %v304_v51, %v276_v50 }
 0x147   :  { %v607_v54 = vpop.eup %606  ;;  %v309_v55 = vmul.f32 %v305_v53, %v277_v52 }
 0x148   :  { %v609_v56 = vpop.eup %608  ;;  %v312_v57 = vmul.f32 %v308_v0, %v265_v38  ;;  %v306_v59 = vadd.f32 1.0, %v607_v54 }
 0x149   :  { %v313_v60 = vmul.f32 %v309_v55, %v267_v41  ;;  %v307_v62 = vadd.f32 1.0, %v609_v56 }
 0x14a   :  { %v310_v63 = vmul.f32 %v306_v59, %v278_v58 }
 0x14b   :  { %v311_v1 = vmul.f32 %v307_v62, %v279_v61  ;;  %412 = vmatprep.mubr.f32.mxu0 %v313_v60 }
 0x14c   :  { %v314_v2 = vmul.f32 %v310_v63, %v271_v45  ;;  %413 = vmatmul.mubr.f32.vlgmr.msra.gmra.mrb[4].mxu0 %v312_v57 }
 0x14d   :  { %v315_v3 = vmul.f32 %v311_v1, %v273_v47 }
 0x14f   :  { %417 = vmatprep.mubr.f32.mxu1 %v315_v3 }
 0x150   :  { %418 = vmatmul.mubr.f32.vlgmr.msra.gmra.mrb[4].mxu1 %v314_v2 }
 0x21f   :  { %v475_v4 = vpop.f32.mrb[4].mxu0 }
 0x220   :  { %v476_v5 = vpop.f32.mrb[5].mxu0 }
 0x221   :  { %v477_v6 = vadd.f32 %v476_v5, %v475_v4 }
 0x223   :  { %423 = vst [vmem:[#allocation8] sm:$0xff] %v477_v6  ;;  %v478_v7 = vpop.f32.mrb[4].mxu1 }
 0x224   :  { %v479_v8 = vpop.f32.mrb[5].mxu1 }
 0x225   :  { %v480_v9 = vadd.f32 %v479_v8, %v478_v7 }
 0x227   :  { %424 = vst [vmem:[#allocation8 + $0x8] sm:$0xff] %v480_v9 }
 0x228   :  { %687 = shalt.err (!%p684_p0)
}
 0x229   :  { %s688_s27 = scalar_lea.hbm %s797_s3, 256 }
 0x22a   :  { %p689_p1 = scmp.ne.s32.totalorder %s797_s3, %s688_s27  ;;  %p692_p2 = scmp.lt.u32.totalorder %s688_s27, %s797_s3 }
 0x22c   :  { %p694_p3 = pnand %p692_p2, %p689_p1 }
 0x22e   :  { %697 = shalt.err (!%p694_p3)
}
 0x22f   :  { %436 = dma.vmem_to_hbm [thread:$0]  %s431_s23, 256, %s797_s3, [#allocation4], %s708_s1, %s708_s1, %s709_s9  }
 0x230   :  { %702 = dma.done.wait [#allocation4], 256  }
 0x231   :  { %703 = vsyncadd [#allocation4], 4294967040 }
 0x232   :  { %440 = vsyncpa [#allocation3], 1 }
 0x233   :  { %441 = vsyncpa [#allocation6], 1 }
 0x234   :  { %442 = vsyncpa [#allocation4], 1 }

</bundles_post_ra>
